<compile_context>
chip_gen: v7x
topology: tpu7x:2x2x1
jax: 0.10.0
libtpu: 0.0.40
codegen_flags: <defaults>
</compile_context>

<pallas_src>
import math

import jax
import jax.numpy as jnp
from jax.experimental import pallas as pl
from jax.experimental.pallas import tpu as pltpu


# ---------------------------------------------------------------------------
# Fused kernel: hgc1 -> relu -> hgc2 -> (emb out) -> fc -> (predict out)
# ---------------------------------------------------------------------------
def hgnn_fused_kernel(x_ref, g_ref, w1_ref, b1_ref, w2_ref, b2_ref,
                      wfc_ref, mask_ref, selb_ref, selk_ref, bfc_ref,
                      emb_ref, pred_ref):
    """Single-block kernel (no grid). Shapes:

    x_ref    : (B*N, Cin)   x with batch folded into sublanes
    g_ref    : (N, N)       shared hypergraph Laplacian
    w1_ref   : (Cin, Cout),  b1_ref : (1, Cout)
    w2_ref   : (Cout, Cout), b2_ref : (1, Cout)
    wfc_ref  : (Cout, N*K)  classifier weight folded: [c, n*K + k] = Wfc[k, n*Cout + c]
    mask_ref : (B*N, N*K)   1.0 where (row % N) == (col // K)   (diagonal-in-n mask)
    selb_ref : (B, B*N)     1.0 where col // N == row            (per-batch row sum)
    selk_ref : (N*K, K)     1.0 where row % K == col             (per-class col sum)
    bfc_ref  : (1, K)
    emb_ref  : (B*N, Cout)  output embedding (sublane-folded)
    pred_ref : (B, K)       output logits
    """
    BN, _ = emb_ref.shape
    N = g_ref.shape[0]
    B = BN // N

    g = g_ref[...]

    # ---- hgc1: relu(G @ (x @ W1 + b1)) ----
    # One dense GEMM for the weight over the whole folded batch.
    xw = jnp.dot(x_ref[...], w1_ref[...],
                 preferred_element_type=jnp.float32) + b1_ref[...]       # (B*N, Cout)
    # Per-batch G apply: static, sublane-aligned row slices (B is small).
    gxw = jnp.concatenate(
        [jnp.dot(g, xw[b * N:(b + 1) * N, :], preferred_element_type=jnp.float32)
         for b in range(B)], axis=0)                                      # (B*N, Cout)
    h1 = jnp.maximum(gxw, 0.0)

    # ---- hgc2: G @ (h1 @ W2 + b2) ----
    hw = jnp.dot(h1, w2_ref[...],
                 preferred_element_type=jnp.float32) + b2_ref[...]        # (B*N, Cout)
    emb = jnp.concatenate(
        [jnp.dot(g, hw[b * N:(b + 1) * N, :], preferred_element_type=jnp.float32)
         for b in range(B)], axis=0)                                      # (B*N, Cout)
    emb_ref[...] = emb.astype(emb_ref.dtype)                              # one block store

    # ---- fc fused without any flatten/scatter ----
    # u[b*N+n, n'*K+k] = sum_c emb[b,n,c] * Wfc[k, n'*Cout + c]
    u = jnp.dot(emb, wfc_ref[...], preferred_element_type=jnp.float32)    # (B*N, N*K)
    u = u * mask_ref[...]                                                 # keep n == n'
    su = jnp.dot(selb_ref[...], u, preferred_element_type=jnp.float32)    # (B, N*K)
    pred = jnp.dot(su, selk_ref[...],
                   preferred_element_type=jnp.float32) + bfc_ref[...]     # (B, K)
    pred_ref[...] = pred.astype(pred_ref.dtype)


# ---------------------------------------------------------------------------
# One-time parameter folding (done at init, NOT per forward call)
# ---------------------------------------------------------------------------
def fold_params(params, batch_size, num_electrodes):
    """Fold the classifier weight to a lane-dense shape and precompute the
    static selection matrices for the fused classifier contraction."""
    B, N = batch_size, num_electrodes
    Cin, Cout = params["w1"].shape
    K = params["wfc"].shape[0]

    # Wfc (K, N*Cout) -> (Cout, N*K), [c, n*K + k] = Wfc[k, n*Cout + c]
    wfc_fold = jnp.transpose(params["wfc"].reshape(K, N, Cout),
                             (2, 1, 0)).reshape(Cout, N * K)

    rows = jnp.arange(B * N)
    cols = jnp.arange(N * K)
    mask = (rows[:, None] % N == cols[None, :] // K).astype(jnp.float32)   # (B*N, N*K)
    sel_b = (rows[None, :] // N == jnp.arange(B)[:, None]).astype(jnp.float32)  # (B, B*N)
    sel_k = (cols[:, None] % K == jnp.arange(K)[None, :]).astype(jnp.float32)   # (N*K, K)

    return {
        "w1": params["w1"], "b1_row": params["b1"][None, :],
        "w2": params["w2"], "b2_row": params["b2"][None, :],
        "wfc_fold": wfc_fold, "mask": mask,
        "sel_b": sel_b, "sel_k": sel_k,
        "bfc_row": params["bfc"][None, :],
    }


# ---------------------------------------------------------------------------
# Forward wrapper (single pallas_call, no grid)
# ---------------------------------------------------------------------------
@jax.jit
def hgnn_forward(x, G, fparams):
    """Full HGNN forward. Returns (predict, result_emb)."""
    B, N, Cin = x.shape
    Cout = fparams["w1"].shape[1]
    K = fparams["bfc_row"].shape[1]

    # Free row-major view: fold batch into sublanes (no transpose, no dispatch).
    x2 = x.reshape(B * N, Cin)

    vmem = pl.BlockSpec(memory_space=pltpu.MemorySpace.VMEM)
    emb2, pred = pl.pallas_call(
        hgnn_fused_kernel,
        out_shape=(
            jax.ShapeDtypeStruct((B * N, Cout), jnp.float32),
            jax.ShapeDtypeStruct((B, K), jnp.float32),
        ),
        in_specs=[vmem] * 11,
        out_specs=(vmem, vmem),
    )(x2, G, fparams["w1"], fparams["b1_row"], fparams["w2"], fparams["b2_row"],
      fparams["wfc_fold"], fparams["mask"], fparams["sel_b"], fparams["sel_k"],
      fparams["bfc_row"])

    emb = emb2.reshape(B, N, Cout)   # free view back to (B, N, Cout)
    return pred, emb


# ---------------------------------------------------------------------------
# Deterministic parameter init (mirrors the PyTorch __init__ semantics)
# ---------------------------------------------------------------------------
def init_params(key, in_channels, num_electrodes, out_channels, num_classes):
    k1, k2, k3, k4, k5 = jax.random.split(key, 5)

    # HGNN_conv.reset_parameters: uniform(-stdv, stdv), stdv = 1/sqrt(out_ft)
    stdv1 = 1.0 / math.sqrt(out_channels)
    w1 = jax.random.uniform(k1, (in_channels, out_channels),
                            minval=-stdv1, maxval=stdv1, dtype=jnp.float32)
    b1 = jax.random.uniform(k2, (out_channels,),
                            minval=-stdv1, maxval=stdv1, dtype=jnp.float32)

    stdv2 = 1.0 / math.sqrt(out_channels)
    w2 = jax.random.uniform(k3, (out_channels, out_channels),
                            minval=-stdv2, maxval=stdv2, dtype=jnp.float32)
    b2 = jax.random.uniform(k4, (out_channels,),
                            minval=-stdv2, maxval=stdv2, dtype=jnp.float32)

    # Linear: xavier_normal_ on weight (num_classes, N*out), zeros bias
    fan_in = num_electrodes * out_channels
    fan_out = num_classes
    xavier_std = math.sqrt(2.0 / (fan_in + fan_out))
    wfc = xavier_std * jax.random.normal(k5, (num_classes, fan_in), dtype=jnp.float32)
    bfc = jnp.zeros((num_classes,), dtype=jnp.float32)

    return {"w1": w1, "b1": b1, "w2": w2, "b2": b2, "wfc": wfc, "bfc": bfc}


# ---------------------------------------------------------------------------
# Pure-JAX reference (for correctness check)
# ---------------------------------------------------------------------------
def hgnn_ref(x, G, p):
    h1 = jnp.maximum(jnp.einsum("nm,bmf->bnf", G, x @ p["w1"] + p["b1"]), 0.0)
    emb = jnp.einsum("nm,bmf->bnf", G, h1 @ p["w2"] + p["b2"])
    result = emb.reshape(x.shape[0], -1)
    predict = result @ p["wfc"].T + p["bfc"]
    return predict, emb


if __name__ == "__main__":
    # Small shapes consistent with HGNN(in_channels, num_electrodes, k_adj, out_channels)
    B = 2                # batch
    N = 16               # num_electrodes
    Cin = 32             # in_channels
    Cout = 32            # out_channels
    num_classes = 2      # k_adj is unused by forward

    key = jax.random.PRNGKey(0)
    kx, kg, kp = jax.random.split(key, 3)

    x = jax.random.normal(kx, (B, N, Cin), dtype=jnp.float32)
    G = jax.random.normal(kg, (N, N), dtype=jnp.float32)
    params = init_params(kp, Cin, N, Cout, num_classes)
    fparams = fold_params(params, B, N)   # one-time weight folding

    predict, emb = hgnn_forward(x, G, fparams)
    predict = jax.block_until_ready(predict)
    emb = jax.block_until_ready(emb)

    # sanity check against pure-JAX reference
    predict_ref, emb_ref = hgnn_ref(x, G, params)
    assert predict.shape == (B, num_classes)
    assert emb.shape == (B, N, Cout)
    assert jnp.allclose(predict, predict_ref, atol=1e-4, rtol=1e-4)
    assert jnp.allclose(emb, emb_ref, atol=1e-4, rtol=1e-4)

    print("KERNEL_OK")
</pallas_src>

<mosaic_0001>
module attributes {stable_mosaic.version = 11 : i64} {
  func.func @hgnn_fused_kernel(%arg0: memref<32x32xf32, #tpu.memory_space<vmem>>, %arg1: memref<16x16xf32, #tpu.memory_space<vmem>>, %arg2: memref<32x32xf32, #tpu.memory_space<vmem>>, %arg3: memref<1x32xf32, #tpu.memory_space<vmem>>, %arg4: memref<32x32xf32, #tpu.memory_space<vmem>>, %arg5: memref<1x32xf32, #tpu.memory_space<vmem>>, %arg6: memref<32x32xf32, #tpu.memory_space<vmem>>, %arg7: memref<32x32xf32, #tpu.memory_space<vmem>>, %arg8: memref<2x32xf32, #tpu.memory_space<vmem>>, %arg9: memref<32x2xf32, #tpu.memory_space<vmem>>, %arg10: memref<1x2xf32, #tpu.memory_space<vmem>>, %arg11: memref<32x32xf32, #tpu.memory_space<vmem>>, %arg12: memref<2x2xf32, #tpu.memory_space<vmem>>) attributes {dimension_semantics = [], scalar_prefetch = 0 : i64, scratch_operands = 0 : i64, tpu.core_type = #tpu.core_type<tc>} {
    %c0 = arith.constant 0 : index
    %c0_0 = arith.constant 0 : index
    %0 = vector.load %arg1[%c0, %c0_0] : memref<16x16xf32, #tpu.memory_space<vmem>>, vector<16x16xf32>
    %c0_1 = arith.constant 0 : index
    %c0_2 = arith.constant 0 : index
    %1 = vector.load %arg0[%c0_1, %c0_2] : memref<32x32xf32, #tpu.memory_space<vmem>>, vector<32x32xf32>
    %c0_3 = arith.constant 0 : index
    %c0_4 = arith.constant 0 : index
    %2 = vector.load %arg2[%c0_3, %c0_4] : memref<32x32xf32, #tpu.memory_space<vmem>>, vector<32x32xf32>
    %cst = arith.constant dense<0.000000e+00> : vector<32x32xf32>
    %3 = tpu.matmul %1, %2, %cst {dimension_numbers = #tpu.dot_dimension_numbers<[1], [0], [0], [1], [0, 0, 1, 1], [], []>} : vector<32x32xf32>, vector<32x32xf32>, vector<32x32xf32> -> vector<32x32xf32>
    %c0_5 = arith.constant 0 : index
    %c0_6 = arith.constant 0 : index
    %4 = vector.load %arg3[%c0_5, %c0_6] : memref<1x32xf32, #tpu.memory_space<vmem>>, vector<1x32xf32>
    %5 = vector.broadcast %4 : vector<1x32xf32> to vector<32x32xf32>
    %6 = arith.addf %3, %5 : vector<32x32xf32>
    %7 = vector.extract_strided_slice %6 {offsets = [0, 0], sizes = [16, 32], strides = [1, 1]} : vector<32x32xf32> to vector<16x32xf32>
    %cst_7 = arith.constant dense<0.000000e+00> : vector<16x32xf32>
    %8 = tpu.matmul %0, %7, %cst_7 {dimension_numbers = #tpu.dot_dimension_numbers<[1], [0], [0], [1], [0, 0, 1, 1], [], []>} : vector<16x16xf32>, vector<16x32xf32>, vector<16x32xf32> -> vector<16x32xf32>
    %9 = vector.extract_strided_slice %6 {offsets = [16, 0], sizes = [16, 32], strides = [1, 1]} : vector<32x32xf32> to vector<16x32xf32>
    %cst_8 = arith.constant dense<0.000000e+00> : vector<16x32xf32>
    %10 = tpu.matmul %0, %9, %cst_8 {dimension_numbers = #tpu.dot_dimension_numbers<[1], [0], [0], [1], [0, 0, 1, 1], [], []>} : vector<16x16xf32>, vector<16x32xf32>, vector<16x32xf32> -> vector<16x32xf32>
    %11 = tpu.concatenate %8, %10 in 0 : vector<16x32xf32>, vector<16x32xf32> -> vector<32x32xf32>
    %cst_9 = arith.constant 0.000000e+00 : f32
    %12 = vector.broadcast %cst_9 : f32 to vector<32x32xf32>
    %13 = arith.maximumf %11, %12 : vector<32x32xf32>
    %c0_10 = arith.constant 0 : index
    %c0_11 = arith.constant 0 : index
    %14 = vector.load %arg4[%c0_10, %c0_11] : memref<32x32xf32, #tpu.memory_space<vmem>>, vector<32x32xf32>
    %cst_12 = arith.constant dense<0.000000e+00> : vector<32x32xf32>
    %15 = tpu.matmul %13, %14, %cst_12 {dimension_numbers = #tpu.dot_dimension_numbers<[1], [0], [0], [1], [0, 0, 1, 1], [], []>} : vector<32x32xf32>, vector<32x32xf32>, vector<32x32xf32> -> vector<32x32xf32>
    %c0_13 = arith.constant 0 : index
    %c0_14 = arith.constant 0 : index
    %16 = vector.load %arg5[%c0_13, %c0_14] : memref<1x32xf32, #tpu.memory_space<vmem>>, vector<1x32xf32>
    %17 = vector.broadcast %16 : vector<1x32xf32> to vector<32x32xf32>
    %18 = arith.addf %15, %17 : vector<32x32xf32>
    %19 = vector.extract_strided_slice %18 {offsets = [0, 0], sizes = [16, 32], strides = [1, 1]} : vector<32x32xf32> to vector<16x32xf32>
    %cst_15 = arith.constant dense<0.000000e+00> : vector<16x32xf32>
    %20 = tpu.matmul %0, %19, %cst_15 {dimension_numbers = #tpu.dot_dimension_numbers<[1], [0], [0], [1], [0, 0, 1, 1], [], []>} : vector<16x16xf32>, vector<16x32xf32>, vector<16x32xf32> -> vector<16x32xf32>
    %21 = vector.extract_strided_slice %18 {offsets = [16, 0], sizes = [16, 32], strides = [1, 1]} : vector<32x32xf32> to vector<16x32xf32>
    %cst_16 = arith.constant dense<0.000000e+00> : vector<16x32xf32>
    %22 = tpu.matmul %0, %21, %cst_16 {dimension_numbers = #tpu.dot_dimension_numbers<[1], [0], [0], [1], [0, 0, 1, 1], [], []>} : vector<16x16xf32>, vector<16x32xf32>, vector<16x32xf32> -> vector<16x32xf32>
    %23 = tpu.concatenate %20, %22 in 0 : vector<16x32xf32>, vector<16x32xf32> -> vector<32x32xf32>
    %c0_17 = arith.constant 0 : index
    %c0_18 = arith.constant 0 : index
    %24 = vector.load %arg11[%c0_17, %c0_18] : memref<32x32xf32, #tpu.memory_space<vmem>>, vector<32x32xf32>
    tpu.vector_store %arg11[%c0_17, %c0_18], %23 {strides = array<i32>} : memref<32x32xf32, #tpu.memory_space<vmem>>, vector<32x32xf32>,
    %c0_19 = arith.constant 0 : index
    %c0_20 = arith.constant 0 : index
    %25 = vector.load %arg6[%c0_19, %c0_20] : memref<32x32xf32, #tpu.memory_space<vmem>>, vector<32x32xf32>
    %cst_21 = arith.constant dense<0.000000e+00> : vector<32x32xf32>
    %26 = tpu.matmul %23, %25, %cst_21 {dimension_numbers = #tpu.dot_dimension_numbers<[1], [0], [0], [1], [0, 0, 1, 1], [], []>} : vector<32x32xf32>, vector<32x32xf32>, vector<32x32xf32> -> vector<32x32xf32>
    %c0_22 = arith.constant 0 : index
    %c0_23 = arith.constant 0 : index
    %27 = vector.load %arg7[%c0_22, %c0_23] : memref<32x32xf32, #tpu.memory_space<vmem>>, vector<32x32xf32>
    %28 = arith.mulf %26, %27 : vector<32x32xf32>
    %c0_24 = arith.constant 0 : index
    %c0_25 = arith.constant 0 : index
    %29 = vector.load %arg8[%c0_24, %c0_25] : memref<2x32xf32, #tpu.memory_space<vmem>>, vector<2x32xf32>
    %cst_26 = arith.constant dense<0.000000e+00> : vector<2x32xf32>
    %30 = tpu.matmul %29, %28, %cst_26 {dimension_numbers = #tpu.dot_dimension_numbers<[1], [0], [0], [1], [0, 0, 1, 1], [], []>} : vector<2x32xf32>, vector<32x32xf32>, vector<2x32xf32> -> vector<2x32xf32>
    %c0_27 = arith.constant 0 : index
    %c0_28 = arith.constant 0 : index
    %31 = vector.load %arg9[%c0_27, %c0_28] : memref<32x2xf32, #tpu.memory_space<vmem>>, vector<32x2xf32>
    %cst_29 = arith.constant dense<0.000000e+00> : vector<2x2xf32>
    %32 = tpu.matmul %30, %31, %cst_29 {dimension_numbers = #tpu.dot_dimension_numbers<[1], [0], [0], [1], [0, 0, 1, 1], [], []>} : vector<2x32xf32>, vector<32x2xf32>, vector<2x2xf32> -> vector<2x2xf32>
    %c0_30 = arith.constant 0 : index
    %c0_31 = arith.constant 0 : index
    %33 = vector.load %arg10[%c0_30, %c0_31] : memref<1x2xf32, #tpu.memory_space<vmem>>, vector<1x2xf32>
    %34 = vector.broadcast %33 : vector<1x2xf32> to vector<2x2xf32>
    %35 = arith.addf %32, %34 : vector<2x2xf32>
    %c0_32 = arith.constant 0 : index
    %c0_33 = arith.constant 0 : index
    %36 = vector.load %arg12[%c0_32, %c0_33] : memref<2x2xf32, #tpu.memory_space<vmem>>, vector<2x2xf32>
    tpu.vector_store %arg12[%c0_32, %c0_33], %35 {strides = array<i32>} : memref<2x2xf32, #tpu.memory_space<vmem>>, vector<2x2xf32>,
    return
  }
}

</mosaic_0001>

<bundles_post_ra>
// kernel: hgnn_forward.1
= control target key start
LH: loop header
LB: loop body
LE: loop exit
PB: predicated region body
PF: predicated region fallthrough
CT: control target
= control target key end

     0   :  { %18 = vsyncpa [#allocation3], 0  ;;  %s1750_s0 = inlined_call_operand.vmem [shape: f32[32,32], index: 0, kind: input, shape index: {}]   ;;  %s1751_s1 = inlined_call_operand.hbm [shape: f32[16,16], index: 1, kind: input, shape index: {}]   ;;  %s1752_s2 = inlined_call_operand.vmem [shape: f32[32,32], index: 2, kind: input, shape index: {}]   ;;  %s1753_s3 = inlined_call_operand.hbm [shape: f32[1,32], index: 3, kind: input, shape index: {}]   ;;  %s1754_s4 = inlined_call_operand.hbm [shape: f32[32,32], index: 4, kind: input, shape index: {}]   ;;  %s1755_s5 = inlined_call_operand.hbm [shape: f32[1,32], index: 5, kind: input, shape index: {}]   ;;  %s1756_s6 = inlined_call_operand.hbm [shape: f32[32,32], index: 6, kind: input, shape index: {}]   ;;  %s1757_s7 = inlined_call_operand.hbm [shape: f32[32,32], index: 7, kind: input, shape index: {}]   ;;  %s1758_s8 = inlined_call_operand.hbm [shape: f32[2,32], index: 8, kind: input, shape index: {}]   ;;  %s1759_s9 = inlined_call_operand.vmem [shape: f32[32,2], index: 9, kind: input, shape index: {}]   ;;  %s1760_s10 = inlined_call_operand.hbm [shape: f32[1,2], index: 10, kind: input, shape index: {}]   ;;  %s1761_s11 = inlined_call_operand.hbm [shape: f32[32,32], index: 11, kind: output, shape index: {0}]   ;;  %s1762_s12 = inlined_call_operand.hbm [shape: f32[2,2], index: 12, kind: output, shape index: {1}]  }
   0x1   :  { %19 = vsyncpa [#allocation6], 0 }
   0x2   :  { %20 = vsyncpa [#allocation9], 0 }
   0x3   :  { %21 = vsyncpa [#allocation12], 0 }
   0x4   :  { %22 = vsyncpa [#allocation15], 0 }
   0x5   :  { %23 = vsyncpa [#allocation4], 0 }
   0x6   :  { %24 = vsyncpa [#allocation18], 0  ;;  %s1453_s21 = smov [#allocation5]   ;;  %s1454_s23 = smov [#allocation8]  }
   0x7   :  { %s47_s22 = sshll.u32 %s1453_s21, 4  ;;  %s69_s24 = sshll.u32 %s1454_s23, 4  ;;  %s48_s22 = int_to_ptr.vmem [resolvable:$true] %s47_s22  ;;  %s70_s24 = int_to_ptr.vmem [resolvable:$true] %s69_s24 }
   0x8   :  { %s1219_s27 = scalar_lea.hbm %s1753_s3, 16 }
   0x9   :  { %p1220_p0 = scmp.ne.s32.totalorder %s1753_s3, %s1219_s27  ;;  %p1223_p1 = scmp.lt.u32.totalorder %s1219_s27, %s1753_s3 }
   0xb   :  { %p1225_p2 = pnand %p1223_p1, %p1220_p0 }
   0xd   :  { %1228 = shalt.err (!%p1225_p2)
}
   0xe   :  { %s1229_s14 = scalar_lea.vmem %s48_s22, 16  ;;  %s1233_s15 = scalar_lea.vmem %s48_s22, 32 }
   0xf   :  { %p1230_p3 = scmp.ne.s32.totalorder %s48_s22, %s1229_s14  ;;  %p1234_p4 = scmp.lt.s32.totalorder %s48_s22, %s48_s22 }
  0x10   :  { %p1235_p5 = scmp.lt.s32.totalorder %s1233_s15, %s1229_s14 }
  0x12   :  { %p1236_p6 = por %p1235_p5, %p1234_p4 }
  0x14   :  { %p1237_p7 = pnand %p1236_p6, %p1230_p3 }
  0x16   :  { %1240 = shalt.err (!%p1237_p7)
}
  0x17   :  { %50 = dma.hbm_to_vmem [thread:$0]  %s1753_s3, 16, %s48_s22, [#allocation6]  }
  0x18   :  { %s1241_s20 = scalar_lea.hbm %s1755_s5, 16 }
  0x19   :  { %p1242_p8 = scmp.ne.s32.totalorder %s1755_s5, %s1241_s20  ;;  %p1245_p9 = scmp.lt.u32.totalorder %s1241_s20, %s1755_s5 }
  0x1b   :  { %p1247_p10 = pnand %p1245_p9, %p1242_p8 }
  0x1d   :  { %1250 = shalt.err (!%p1247_p10)
}
  0x1e   :  { %s1251_s27 = scalar_lea.vmem %s70_s24, 16  ;;  %s1255_s28 = scalar_lea.vmem %s70_s24, 32 }
  0x1f   :  { %p1252_p11 = scmp.ne.s32.totalorder %s70_s24, %s1251_s27  ;;  %p1256_p12 = scmp.lt.s32.totalorder %s70_s24, %s70_s24 }
  0x20   :  { %p1257_p13 = scmp.lt.s32.totalorder %s1255_s28, %s1251_s27 }
  0x22   :  { %p1258_p0 = por %p1257_p13, %p1256_p12 }
  0x24   :  { %p1259_p1 = pnand %p1258_p0, %p1252_p11 }
  0x26   :  { %1262 = shalt.err (!%p1259_p1)
}
  0x27   :  { %72 = dma.hbm_to_vmem [thread:$0]  %s1755_s5, 16, %s70_s24, [#allocation9]  }
  0x28   :  { %s1455_s29 = smov [#allocation11]   ;;  %s1456_s13 = smov [#allocation2]  }
  0x29   :  { %s90_s30 = sshll.u32 %s1455_s29, 4  ;;  %s32_s14 = sshll.u32 %s1456_s13, 4  ;;  %s91_s30 = int_to_ptr.vmem [resolvable:$true] %s90_s30  ;;  %s1557_s14 = int_to_ptr.vmem [resolvable:$true] %s32_s14 }
  0x2a   :  { %s1263_s17 = scalar_lea.hbm %s1757_s7, 512 }
  0x2b   :  { %p1264_p2 = scmp.ne.s32.totalorder %s1757_s7, %s1263_s17  ;;  %p1267_p3 = scmp.lt.u32.totalorder %s1263_s17, %s1757_s7 }
  0x2d   :  { %p1269_p4 = pnand %p1267_p3, %p1264_p2 }
  0x2f   :  { %1272 = shalt.err (!%p1269_p4)
}
  0x30   :  { %s1273_s5 = scalar_lea.vmem %s91_s30, 512  ;;  %p1278_p6 = scmp.lt.s32.totalorder %s91_s30, %s91_s30 }
  0x31   :  { %p1274_p5 = scmp.ne.s32.totalorder %s91_s30, %s1273_s5  ;;  %p1279_p7 = scmp.lt.s32.totalorder %s1273_s5, %s1273_s5 }
  0x33   :  { %p1280_p8 = por %p1279_p7, %p1278_p6 }
  0x35   :  { %p1281_p9 = pnand %p1280_p8, %p1274_p5 }
  0x37   :  { %1284 = shalt.err (!%p1281_p9)
}
  0x38   :  { %s1457_s24 = smov 128   ;;  %s1458_s23 = smov 8  }
  0x39   :  { %96 = dma.hbm_to_vmem [thread:$0]  %s1757_s7, 512, %s91_s30, [#allocation12], %s1457_s24, %s1457_s24, %s1458_s23  }
  0x3a   :  { %s1285_s3 = scalar_lea.hbm %s1751_s1, 256 }
  0x3b   :  { %p1286_p10 = scmp.ne.s32.totalorder %s1751_s1, %s1285_s3  ;;  %p1289_p11 = scmp.lt.u32.totalorder %s1285_s3, %s1751_s1 }
  0x3d   :  { %p1291_p12 = pnand %p1289_p11, %p1286_p10 }
  0x3f   :  { %1294 = shalt.err (!%p1291_p12)
}
  0x40   :  { %s1295_s16 = scalar_lea.vmem %s1557_s14, 256  ;;  %p1300_p0 = scmp.lt.s32.totalorder %s1557_s14, %s1557_s14 }
  0x41   :  { %p1296_p13 = scmp.ne.s32.totalorder %s1557_s14, %s1295_s16  ;;  %p1301_p1 = scmp.lt.s32.totalorder %s1295_s16, %s1295_s16 }
  0x43   :  { %p1302_p2 = por %p1301_p1, %p1300_p0 }
  0x45   :  { %p1303_p3 = pnand %p1302_p2, %p1296_p13 }
  0x47   :  { %1306 = shalt.err (!%p1303_p3)
}
  0x48   :  { %38 = dma.hbm_to_vmem [thread:$0]  %s1751_s1, 256, %s1557_s14, [#allocation3], %s1457_s24, %s1457_s24, %s1458_s23  }
  0x49   :  { %s1459_s17 = smov [#allocation7]   ;;  %s1460_s19 = smov [#allocation10]  }
  0x4a   :  { %s56_s18 = sshll.u32 %s1459_s17, 4  ;;  %s78_s20 = sshll.u32 %s1460_s19, 4  ;;  %s57_s18 = int_to_ptr.vmem [resolvable:$true] %s56_s18  ;;  %s1594_s20 = int_to_ptr.vmem [resolvable:$true] %s78_s20 }
  0x4b   :  { %s1307_s25 = scalar_lea.hbm %s1754_s4, 512 }
  0x4c   :  { %p1308_p4 = scmp.ne.s32.totalorder %s1754_s4, %s1307_s25  ;;  %p1311_p5 = scmp.lt.u32.totalorder %s1307_s25, %s1754_s4 }
  0x4e   :  { %p1313_p6 = pnand %p1311_p5, %p1308_p4 }
  0x50   :  { %1316 = shalt.err (!%p1313_p6)
}
  0x51   :  { %s1317_s1 = scalar_lea.vmem %s57_s18, 512  ;;  %p1322_p8 = scmp.lt.s32.totalorder %s57_s18, %s57_s18 }
  0x52   :  { %p1318_p7 = scmp.ne.s32.totalorder %s57_s18, %s1317_s1  ;;  %p1323_p9 = scmp.lt.s32.totalorder %s1317_s1, %s1317_s1 }
  0x54   :  { %p1324_p10 = por %p1323_p9, %p1322_p8 }
  0x56   :  { %p1325_p11 = pnand %p1324_p10, %p1318_p7 }
  0x58   :  { %1328 = shalt.err (!%p1325_p11)
}
  0x59   :  { %62 = dma.hbm_to_vmem [thread:$0]  %s1754_s4, 512, %s57_s18, [#allocation6], %s1457_s24, %s1457_s24, %s1458_s23  }
  0x5a   :  { %s1329_s15 = scalar_lea.hbm %s1756_s6, 512 }
  0x5b   :  { %p1330_p12 = scmp.ne.s32.totalorder %s1756_s6, %s1329_s15  ;;  %p1333_p13 = scmp.lt.u32.totalorder %s1329_s15, %s1756_s6 }
  0x5d   :  { %p1335_p0 = pnand %p1333_p13, %p1330_p12 }
  0x5f   :  { %1338 = shalt.err (!%p1335_p0)
}
  0x60   :  { %s1339_s19 = scalar_lea.vmem %s1594_s20, 512  ;;  %p1344_p2 = scmp.lt.s32.totalorder %s1594_s20, %s1594_s20 }
  0x61   :  { %p1340_p1 = scmp.ne.s32.totalorder %s1594_s20, %s1339_s19  ;;  %p1345_p3 = scmp.lt.s32.totalorder %s1339_s19, %s1339_s19 }
  0x63   :  { %p1346_p4 = por %p1345_p3, %p1344_p2 }
  0x65   :  { %p1347_p5 = pnand %p1346_p4, %p1340_p1 }
  0x67   :  { %1350 = shalt.err (!%p1347_p5)
}
  0x68   :  { %84 = dma.hbm_to_vmem [thread:$0]  %s1756_s6, 512, %s1594_s20, [#allocation9], %s1457_s24, %s1457_s24, %s1458_s23  }
  0x69   :  { %s1461_s21 = smov [#allocation13]   ;;  %s1462_s25 = smov [#allocation14]  }
  0x6a   :  { %s103_s5 = sshll.u32 %s1461_s21, 4  ;;  %s115_s26 = sshll.u32 %s1462_s25, 4  ;;  %s104_s5 = int_to_ptr.vmem [resolvable:$true] %s103_s5  ;;  %s116_s26 = int_to_ptr.vmem [resolvable:$true] %s115_s26 }
  0x6b   :  { %s1351_s3 = scalar_lea.hbm %s1758_s8, 32 }
  0x6c   :  { %p1352_p6 = scmp.ne.s32.totalorder %s1758_s8, %s1351_s3  ;;  %p1355_p7 = scmp.lt.u32.totalorder %s1351_s3, %s1758_s8 }
  0x6e   :  { %p1357_p8 = pnand %p1355_p7, %p1352_p6 }
  0x70   :  { %1360 = shalt.err (!%p1357_p8)
}
  0x71   :  { %s1361_s6 = scalar_lea.vmem %s104_s5, 32  ;;  %p1366_p10 = scmp.lt.s32.totalorder %s104_s5, %s104_s5 }
  0x72   :  { %p1362_p9 = scmp.ne.s32.totalorder %s104_s5, %s1361_s6  ;;  %p1367_p11 = scmp.lt.s32.totalorder %s1361_s6, %s1361_s6 }
  0x74   :  { %p1368_p12 = por %p1367_p11, %p1366_p10 }
  0x76   :  { %p1369_p13 = pnand %p1368_p12, %p1362_p9 }
  0x78   :  { %1372 = shalt.err (!%p1369_p13)
}
  0x79   :  { %106 = dma.hbm_to_vmem [thread:$0]  %s1758_s8, 32, %s104_s5, [#allocation12]  }
  0x7a   :  { %s1373_s7 = scalar_lea.hbm %s1760_s10, 16 }
  0x7b   :  { %p1374_p0 = scmp.ne.s32.totalorder %s1760_s10, %s1373_s7  ;;  %p1377_p1 = scmp.lt.u32.totalorder %s1373_s7, %s1760_s10 }
  0x7d   :  { %p1379_p2 = pnand %p1377_p1, %p1374_p0 }
  0x7f   :  { %1382 = shalt.err (!%p1379_p2)
}
  0x80   :  { %s1383_s18 = scalar_lea.vmem %s116_s26, 16  ;;  %s1387_s21 = scalar_lea.vmem %s116_s26, 32 }
  0x81   :  { %p1384_p3 = scmp.ne.s32.totalorder %s116_s26, %s1383_s18  ;;  %p1388_p4 = scmp.lt.s32.totalorder %s116_s26, %s116_s26 }
  0x82   :  { %p1389_p5 = scmp.lt.s32.totalorder %s1387_s21, %s1383_s18 }
  0x84   :  { %p1390_p6 = por %p1389_p5, %p1388_p4 }
  0x86   :  { %p1391_p7 = pnand %p1390_p6, %p1384_p3 }
  0x88   :  { %1394 = shalt.err (!%p1391_p7)
}
  0x89   :  { %118 = dma.hbm_to_vmem [thread:$0]  %s1760_s10, 16, %s116_s26, [#allocation15]  }
  0x8a   :  { %1439 = dma.done.wait [#allocation3], 256  }
  0x8b   :  { %1440 = vsyncadd [#allocation3], 4294967040 }
  0x8c   :  { %1441 = dma.done.wait [#allocation6], 528  }
  0x8d   :  { %1442 = vsyncadd [#allocation6], 4294966768 }
  0x8e   :  { %1443 = dma.done.wait [#allocation9], 528  }
  0x8f   :  { %1444 = vsyncadd [#allocation9], 4294966768 }
  0x90   :  { %1445 = dma.done.wait [#allocation12], 544  }
  0x91   :  { %1446 = vsyncadd [#allocation12], 4294966752 }
  0x92   :  { %1447 = dma.done.wait [#allocation15], 16  }
  0x93   :  { %1448 = vsyncadd [#allocation15], 4294967280  ;;  %vm160_vm0 = vcmask 261120   ;;  %v149_v0 = vld [vmem:[%s1752_s2] sm:$0xff]  ;;  %v150_v1 = vld [vmem:[%s1752_s2 + $0x8] sm:$0xff]  ;;  %vm258_vm1 = vcmask 130048  }
  0x94   :  { %v151_v2 = vld [vmem:[%s1752_s2 + $0x10] sm:$0xff]  ;;  %v1152_v3 = vpack.c.bf16 %v150_v1, %v149_v0  ;;  %v152_v4 = vld [vmem:[%s1752_s2 + $0x18] sm:$0xff]  ;;  %v145_v5 = vld [vmem:[%s1750_s0] sm:$0xff]  ;;  %v1463_v58 = vmov 0.0|0.0   ;;  %vm1464_vm2 = vmmov 0   ;;  %v1465_v59 = vmov 0.0  }
  0x95   :  { %v1156_v6 = vpack.c.bf16 %v152_v4, %v151_v2  ;;  %1068 = vmatprep.mubr.msk.f32.mxu0 %vm160_vm0, %v145_v5  ;;  %v146_v7 = vld [vmem:[%s1750_s0 + $0x8] sm:$0xff]  ;;  %v147_v8 = vld [vmem:[%s1750_s0 + $0x10] sm:$0xff]  ;;  %v148_v9 = vld [vmem:[%s1750_s0 + $0x18] sm:$0xff] }
  0x96   :  { %1153 = vmatprep.subr.bf16.mxu0 %v1152_v3  ;;  %v1683_v10 = vld [vmem:[#allocation2] sm:$0xff]  ;;  %v419_v11 = vld [vmem:[#allocation7] sm:$0xff]  ;;  %v985_v14 = vld [vmem:[#allocation5] ss:$0 sm:$0xff] }
  0x97   :  { %1155 = vmatpush3.bf16.msra.mxu0 %v1152_v3  ;;  %1078 = vmatprep.mubr.msk.f32.mxu1 %vm258_vm1, %v1683_v10  ;;  %v420_v12 = vld [vmem:[#allocation7 + $0x8] sm:$0xff]  ;;  %v144_v24 = vld [vmem:[#allocation2 + $0x8] sm:$0xff]  ;;  %v994_v43 = vld [vmem:[#allocation8] ss:$0 sm:$0xff] }
  0x98   :  { %1157 = vmatprep.subr.bf16.mxu0 %v1156_v6  ;;  %v1168_v13 = vpack.c.bf16 %v420_v12, %v419_v11  ;;  %v421_v26 = vld [vmem:[#allocation7 + $0x10] sm:$0xff]  ;;  %v422_v27 = vld [vmem:[#allocation7 + $0x18] sm:$0xff]  ;;  %v681_v37 = vld [vmem:[#allocation10] sm:$0xff] }
  0x99   :  { %v1172_v28 = vpack.c.bf16 %v422_v27, %v421_v26  ;;  %v682_v38 = vld [vmem:[#allocation10 + $0x8] sm:$0xff]  ;;  %v683_v39 = vld [vmem:[#allocation10 + $0x10] sm:$0xff]  ;;  %v684_v41 = vld [vmem:[#allocation10 + $0x18] sm:$0xff] }
  0x9a   :  { %v1184_v40 = vpack.c.bf16 %v682_v38, %v681_v37  ;;  %v1188_v42 = vpack.c.bf16 %v684_v41, %v683_v39  ;;  %v864_v60 = vld [vmem:[%s1759_s9] sm:$0xff]  ;;  %v865_v61 = vld [vmem:[%s1759_s9 + $0x8] sm:$0xff]  ;;  %v866_v62 = vld [vmem:[%s1759_s9 + $0x10] sm:$0xff] }
  0x9b   :  { %1159 = vmatpush3.bf16.msra.mxu0 %v1156_v6  ;;  %v1199_v63 = vpack.c.bf16 %v865_v61, %v864_v60  ;;  %v867_v0 = vld [vmem:[%s1759_s9 + $0x18] sm:$0xff]  ;;  %s1466_s9 = smov [#allocation16]  }
  0x9c   :  { %1169 = vmatprep.subr.bf16.mxu0 %v1168_v13  ;;  %v1202_v1 = vpack.c.bf16 %v867_v0, %v866_v62  ;;  %v783_v2 = vld [vmem:[#allocation11 + $0x8] sm:$0xff]  ;;  %v782_v3 = vld [vmem:[#allocation11] sm:$0xff]  ;;  %s955_s8 = sshll.u32 %s1466_s9, 4  ;;  %s956_s8 = int_to_ptr.vmem [resolvable:$true] %s955_s8 }
  0x9d   :  { %s1395_s5 = scalar_lea.vmem %s956_s8, 512  ;;  %p1400_p9 = scmp.lt.s32.totalorder %s956_s8, %s956_s8 }
  0x9e   :  { %1069 = vmatmul.mubr.msk.f32.vlgmr.msra.gmra.mrb[0].mxu0 %vm160_vm0, %v146_v7  ;;  %p1396_p8 = scmp.ne.s32.totalorder %s956_s8, %s1395_s5  ;;  %p1401_p10 = scmp.lt.s32.totalorder %s1395_s5, %s1395_s5 }
  0x9f   :  { %1071 = vmatprep.mubr.msk.f32.mxu0 %vm160_vm0, %v147_v8  ;;  %1171 = vmatpush3.bf16.msra.mxu0 %v1168_v13  ;;  %v785_v8 = vld [vmem:[#allocation11 + $0x18] sm:$0xff] }
  0xa0   :  { %1173 = vmatprep.subr.bf16.mxu0 %v1172_v28  ;;  %p1402_p11 = por %p1401_p10, %p1400_p9 }
  0xa2   :  { %1072 = vmatmul.mubr.msk.f32.gmra.mrb[2].mxu0 %vm160_vm0, %v148_v9  ;;  %v784_v9 = vld [vmem:[#allocation11 + $0x10] sm:$0xff]  ;;  %p1403_p12 = pnand %p1402_p11, %p1396_p8 }
  0xa3   :  { %1175 = vmatpush3.bf16.msra.mxu0 %v1172_v28 }
  0xa4   :  { %1185 = vmatprep.subr.bf16.mxu0 %v1184_v40 }
 0x171   :  { %v1070_v15 = vpop.f32.mrb[0].mxu0 }
 0x172   :  { %v245_v16 = vadd.f32 %v1070_v15, %v985_v14  ;;  %v239_v17 = vpop.f32.mrb[1].mxu0 }
 0x173   :  { %v240_v18 = vadd.f32 %v985_v14, %v239_v17 }
 0x175   :  { %v1073_v19 = vpop.f32.mrb[2].mxu0  ;;  %v1160_v20 = vpack.c.bf16 %v245_v16, %v240_v18  ;;  %v790_v16 = vld [vmem:[#allocation13] sm:$0x3] }
 0x176   :  { %v255_v21 = vadd.f32 %v1073_v19, %v985_v14  ;;  %v249_v22 = vpop.f32.mrb[3].mxu0 }
 0x177   :  { %v250_v23 = vadd.f32 %v985_v14, %v249_v22  ;;  %1161 = vmatprep.subr.bf16.mxu1 %v1160_v20 }
 0x178   :  { %1163 = vmatpush3.bf16.msra.mxu1 %v1160_v20 }
 0x179   :  { %v1164_v25 = vpack.c.bf16 %v255_v21, %v250_v23 }
 0x17b   :  { %1079 = vmatmul.mubr.msk.f32.vlgmr.msra.gmra.mrb[0].mxu1 %vm258_vm1, %v144_v24  ;;  %1165 = vmatprep.subr.bf16.mxu1 %v1164_v25 }
 0x17c   :  { %1167 = vmatpush3.bf16.msra.mxu1 %v1164_v25  ;;  %1085 = vmatprep.mubr.msk.f32.mxu1 %vm258_vm1, %v1683_v10 }
 0x17f   :  { %1086 = vmatmul.mubr.msk.f32.vlgmr.msra.gmra.mrb[2].mxu1 %vm258_vm1, %v144_v24 }
 0x180   :  { %1106 = vmatprep.mubr.msk.f32.mxu1 %vm258_vm1, %v1683_v10 }
 0x24e   :  { %v1080_v29 = vpop.f32.mrb[0].mxu1 }
 0x24f   :  { %v331_v30 = vpop.f32.mrb[1].mxu1  ;;  %v416_v32 = vmax.f32 %v1080_v29, 0.0 }
 0x250   :  { %v415_v31 = vmax.f32 %v331_v30, 0.0 }
 0x252   :  { %v1087_v33 = vpop.f32.mrb[2].mxu1  ;;  %1096 = vmatprep.mubr.msk.f32.mxu0 %vm160_vm0, %v415_v31 }
 0x253   :  { %v406_v34 = vpop.f32.mrb[3].mxu1  ;;  %1097 = vmatmul.mubr.msk.f32.vlgmr.msra.gmra.mrb[4].mxu0 %vm160_vm0, %v416_v32  ;;  %v418_v36 = vmax.f32 %v1087_v33, 0.0 }
 0x254   :  { %v417_v35 = vmax.f32 %v406_v34, 0.0  ;;  %1187 = vmatpush3.bf16.msra.mxu0 %v1184_v40 }
 0x255   :  { %1189 = vmatprep.subr.bf16.mxu0 %v1188_v42 }
 0x256   :  { %1099 = vmatprep.mubr.msk.f32.mxu0 %vm160_vm0, %v417_v35 }
 0x257   :  { %1100 = vmatmul.mubr.msk.f32.gmra.mrb[6].mxu0 %vm160_vm0, %v418_v36 }
 0x258   :  { %1191 = vmatpush3.bf16.msra.mxu0 %v1188_v42 }
 0x259   :  { %1198 = vmatprep.subr.bf16.mxu0 %v1463_v58 }
 0x326   :  { %v1098_v44 = vpop.f32.mrb[4].mxu0 }
 0x327   :  { %v514_v45 = vadd.f32 %v1098_v44, %v994_v43  ;;  %v508_v46 = vpop.f32.mrb[5].mxu0 }
 0x328   :  { %v509_v47 = vadd.f32 %v994_v43, %v508_v46 }
 0x32a   :  { %v1176_v48 = vpack.c.bf16 %v514_v45, %v509_v47  ;;  %v1101_v49 = vpop.f32.mrb[6].mxu0 }
 0x32b   :  { %v524_v50 = vadd.f32 %v1101_v49, %v994_v43  ;;  %v518_v51 = vpop.f32.mrb[7].mxu0 }
 0x32c   :  { %v519_v52 = vadd.f32 %v994_v43, %v518_v51  ;;  %1177 = vmatprep.subr.bf16.mxu1 %v1176_v48 }
 0x32d   :  { %1179 = vmatpush3.bf16.msra.mxu1 %v1176_v48 }
 0x32e   :  { %v1180_v53 = vpack.c.bf16 %v524_v50, %v519_v52 }
 0x330   :  { %1107 = vmatmul.mubr.msk.f32.vlgmr.msra.gmra.mrb[4].mxu1 %vm258_vm1, %v144_v24  ;;  %1181 = vmatprep.subr.bf16.mxu1 %v1180_v53 }
 0x331   :  { %1183 = vmatpush3.bf16.msra.mxu1 %v1180_v53  ;;  %1113 = vmatprep.mubr.msk.f32.mxu1 %vm258_vm1, %v1683_v10 }
 0x332   :  { %1192 = vmatprep.subr.bf16.mxu1 %v1463_v58 }
 0x334   :  { %1114 = vmatmul.mubr.msk.f32.vlgmr.msra.gmra.mrb[6].mxu1 %vm258_vm1, %v144_v24 }
 0x335   :  { %1138 = vmatprep.mubr.msk.f32.mxu1 %vm1464_vm2, %v1465_v59 }
 0x403   :  { %v1108_v54 = vpop.f32.mrb[4].mxu1 }
 0x404   :  { %678 = vst.msk [vmem:[#allocation16 + $0x8] sm:$0xff] %vm160_vm0, %v1108_v54  ;;  %v593_v55 = vpop.f32.mrb[5].mxu1 }
 0x405   :  { %677 = vst.msk [vmem:[#allocation16] sm:$0xff] %vm160_vm0, %v593_v55  ;;  %1124 = vmatprep.mubr.msk.f32.mxu0 %vm160_vm0, %v593_v55 }
 0x406   :  { %1125 = vmatmul.mubr.msk.f32.vlgmr.msra.gmra.mrb[8].mxu0 %vm160_vm0, %v1108_v54 }
 0x407   :  { %v1115_v56 = vpop.f32.mrb[6].mxu1  ;;  %1200 = vmatpush3.bf16.msra.mxu0 %v1199_v63 }
 0x408   :  { %680 = vst.msk [vmem:[#allocation16 + $0x18] sm:$0xff] %vm160_vm0, %v1115_v56  ;;  %v668_v57 = vpop.f32.mrb[7].mxu1  ;;  %1201 = vmatprep.subr.bf16.mxu0 %v1463_v58 }
 0x409   :  { %679 = vst.msk [vmem:[#allocation16 + $0x10] sm:$0xff] %vm160_vm0, %v668_v57  ;;  %1127 = vmatprep.mubr.msk.f32.mxu0 %vm160_vm0, %v668_v57 }
 0x40a   :  { %1128 = vmatmul.mubr.msk.f32.gmra.mrb[10].mxu0 %vm160_vm0, %v1115_v56 }
 0x40b   :  { %1149 = vmatprep.mubr.msk.f32.mxu0 %vm1464_vm2, %v1465_v59  ;;  %1203 = vmatpush3.bf16.msra.mxu0 %v1202_v1 }
 0x4d9   :  { %v1126_v4 = vpop.f32.mrb[8].mxu0 }
 0x4da   :  { %v787_v5 = vmul.f32 %v1126_v4, %v783_v2  ;;  %v763_v6 = vpop.f32.mrb[9].mxu0 }
 0x4db   :  { %v786_v7 = vmul.f32 %v782_v3, %v763_v6 }
 0x4dd   :  { %v1193_v10 = vpack.c.bf16 %v787_v5, %v786_v7  ;;  %v1129_v11 = vpop.f32.mrb[10].mxu0 }
 0x4de   :  { %v789_v12 = vmul.f32 %v1129_v11, %v785_v8  ;;  %v773_v13 = vpop.f32.mrb[11].mxu0 }
 0x4df   :  { %v788_v14 = vmul.f32 %v784_v9, %v773_v13  ;;  %1194 = vmatpush3.bf16.msra.mxu1 %v1193_v10 }
 0x4e0   :  { %1195 = vmatprep.subr.bf16.mxu1 %v1463_v58 }
 0x4e1   :  { %v1196_v15 = vpack.c.bf16 %v789_v12, %v788_v14 }
 0x4e3   :  { %1197 = vmatpush3.bf16.msra.mxu1 %v1196_v15 }
 0x4e6   :  { %1139 = vmatmul.mubr.msk.f32.vlgmr.msra.gmra.mrb[8].mxu1 %vm160_vm0, %v790_v16 }
 0x5b9   :  { %v860_v17 = vpop.f32.mrb[8].mxu1 }
 0x5ba   :  { %v1140_v18 = vpop.f32.mrb[9].mxu1  ;;  %1150 = vmatmul.mubr.msk.f32.vlgmr.msra.gmra.mrb[12].mxu0 %vm160_vm0, %v860_v17 }
 0x5bb   :  { %1406 = shalt.err (!%p1403_p12)
}
 0x5bc   :  { %s1407_s28 = scalar_lea.hbm %s1761_s11, 512 }
 0x5bd   :  { %p1408_p13 = scmp.ne.s32.totalorder %s1761_s11, %s1407_s28  ;;  %p1411_p0 = scmp.lt.u32.totalorder %s1407_s28, %s1761_s11 }
 0x5bf   :  { %p1413_p1 = pnand %p1411_p0, %p1408_p13 }
 0x5c1   :  { %1416 = shalt.err (!%p1413_p1)
}
 0x5c2   :  { %961 = dma.vmem_to_hbm [thread:$0]  %s956_s8, 512, %s1761_s11, [#allocation4], %s1457_s24, %s1457_s24, %s1458_s23   ;;  %v1008_v19 = vld [vmem:[#allocation14] ss:$0 sm:$0xff]  ;;  %vm948_vm3 = vcmask 9216  }
 0x5c3   :  { %s1467_s29 = smov [#allocation17]  }
 0x5c4   :  { %s968_s6 = sshll.u32 %s1467_s29, 4  ;;  %s969_s6 = int_to_ptr.vmem [resolvable:$true] %s968_s6 }
 0x5c5   :  { %s1417_s20 = scalar_lea.vmem %s969_s6, 32  ;;  %p1422_p3 = scmp.lt.s32.totalorder %s969_s6, %s969_s6 }
 0x5c6   :  { %p1418_p2 = scmp.ne.s32.totalorder %s969_s6, %s1417_s20  ;;  %p1423_p4 = scmp.lt.s32.totalorder %s1417_s20, %s1417_s20 }
 0x5c8   :  { %p1424_p5 = por %p1423_p4, %p1422_p3 }
 0x5ca   :  { %p1425_p6 = pnand %p1424_p5, %p1418_p2 }
 0x68d   :  { %v944_v20 = vpop.f32.mrb[12].mxu0 }
 0x68e   :  { %v945_v21 = vadd.f32 %v1008_v19, %v944_v20  ;;  %v1151_v22 = vpop.f32.mrb[13].mxu0 }
 0x690   :  { %949 = vst.msk [vmem:[#allocation17] sm:$0x3] %vm948_vm3, %v945_v21 }
 0x691   :  { %1428 = shalt.err (!%p1425_p6)
}
 0x692   :  { %s1429_s11 = scalar_lea.hbm %s1762_s12, 32 }
 0x693   :  { %p1430_p7 = scmp.ne.s32.totalorder %s1762_s12, %s1429_s11  ;;  %p1433_p8 = scmp.lt.u32.totalorder %s1429_s11, %s1762_s12 }
 0x695   :  { %p1435_p9 = pnand %p1433_p8, %p1430_p7 }
 0x697   :  { %1438 = shalt.err (!%p1435_p9)
}
 0x698   :  { %971 = dma.vmem_to_hbm [thread:$0]  %s969_s6, 32, %s1762_s12, [#allocation18]  }
 0x699   :  { %1449 = dma.done.wait [#allocation4], 512  }
 0x69a   :  { %1450 = vsyncadd [#allocation4], 4294966784 }
 0x69b   :  { %1451 = dma.done.wait [#allocation18], 32  }
 0x69c   :  { %1452 = vsyncadd [#allocation18], 4294967264 }
 0x69d   :  { %978 = vsyncpa [#allocation3], 1 }
 0x69e   :  { %979 = vsyncpa [#allocation6], 1 }
 0x69f   :  { %980 = vsyncpa [#allocation9], 1 }
 0x6a0   :  { %981 = vsyncpa [#allocation12], 1 }
 0x6a1   :  { %982 = vsyncpa [#allocation15], 1 }
 0x6a2   :  { %983 = vsyncpa [#allocation4], 1 }
 0x6a3   :  { %984 = vsyncpa [#allocation18], 1 }

</bundles_post_ra>
